<compile_context>
chip_gen: v6e
topology: v6e:2x2x1
jax: 0.10.0
libtpu: 0.0.40
codegen_flags: <defaults>
</compile_context>

<pallas_src>
import math

import jax
import jax.numpy as jnp
import numpy as np
from jax.experimental import pallas as pl
from jax.experimental.pallas import tpu as pltpu


def _round_up(x, m):
    return (x + m - 1) // m * m


def graphconv_kernel(x_ref, adj_ref, w1t_ref, b1_ref, w2t_ref, b2_ref, out_ref):
    Bt, Np, Fp = x_ref.shape
    H1p = w1t_ref.shape[1]
    H2p = w2t_ref.shape[1]

    # linear1 over the fused (Bt*Np, Fp) slab -> larger MXU M dimension.
    x2d = x_ref[...].reshape(Bt * Np, Fp)
    l1 = jnp.dot(x2d, w1t_ref[...], preferred_element_type=jnp.float32) + b1_ref[...]

    adj = adj_ref[...]  # (Bt, Np, Np) == sum_r adj_r + I  (residual folded in)

    # hidden = sum_r(adj_r @ L1) + L1 == (sum_r adj_r + I) @ L1
    hidden = jnp.einsum('bij,bjh->bih', adj, l1.reshape(Bt, Np, H1p),
                        preferred_element_type=jnp.float32)

    # linear2 on the fused slab.
    l2 = jnp.dot(hidden.reshape(Bt * Np, H1p), w2t_ref[...],
                 preferred_element_type=jnp.float32) + b2_ref[...]

    # out = sum_r(adj_r @ L2) + L2 == (sum_r adj_r + I) @ L2
    out = jnp.einsum('bij,bjh->bih', adj, l2.reshape(Bt, Np, H2p),
                     preferred_element_type=jnp.float32)
    out_ref[...] = out.astype(out_ref.dtype)


def _pick_batch_tile(B, Np, vmem_budget_bytes=8 << 20):
    """Largest divisor of B that keeps >=2 grid steps (v7x megacore) and a
    modest adjacency block."""
    best = 1
    for bt in range(1, B + 1):
        if B % bt:
            continue
        steps = B // bt
        adj_bytes = bt * Np * Np * 4
        if adj_bytes > vmem_budget_bytes:
            continue
        if steps >= 2 or B == 1:
            best = bt
    return best


def graph_convolution(x, adj, w1, b1, w2, b2, *, batch_tile=None):
    B, N, F = x.shape
    _, R, _, _ = adj.shape
    H1 = w1.shape[0]
    H2 = w2.shape[0]

    # ---- wrapper-side algebra: pre-sum relations and fold the +L residual ----
    # sum_r(adj_r @ L) + L == (sum_r adj_r + I) @ L
    adj_hat = adj.sum(axis=1) + jnp.eye(N, dtype=adj.dtype)[None]          # (B, N, N)

    # ---- pad to lane/MXU friendly sizes (zero padding is semantically inert:
    # padded feature columns of W^T / b are zero; padded node columns of adj_hat
    # are zero, so padded rows never contaminate real rows) ----
    Np = _round_up(N, 8)
    Fp = _round_up(F, 128)
    H1p = _round_up(H1, 128)
    H2p = _round_up(H2, 128)

    dt = x.dtype
    x_p = jnp.zeros((B, Np, Fp), dt).at[:, :N, :F].set(x)
    adj_p = jnp.zeros((B, Np, Np), dt).at[:, :N, :N].set(adj_hat)
    w1t_p = jnp.zeros((Fp, H1p), dt).at[:F, :H1].set(w1.T)                 # pre-transposed
    b1_p = jnp.zeros((1, H1p), dt).at[0, :H1].set(b1)
    w2t_p = jnp.zeros((H1p, H2p), dt).at[:H1, :H2].set(w2.T)               # pre-transposed
    b2_p = jnp.zeros((1, H2p), dt).at[0, :H2].set(b2)

    if batch_tile is None:
        batch_tile = _pick_batch_tile(B, Np)
    assert B % batch_tile == 0, "batch_tile must divide batch size"
    Bt = batch_tile
    grid = (B // Bt,)

    # Rough cost / VMEM hints.
    flops = 2 * B * Np * (Fp * H1p + Np * H1p + H1p * H2p + Np * H2p)
    bytes_accessed = 4 * (B * Np * Fp + B * Np * Np + Fp * H1p + H1p
                          + H1p * H2p + H2p + B * Np * H2p)
    cost = pl.CostEstimate(flops=flops, transcendentals=0,
                           bytes_accessed=bytes_accessed)
    block_bytes = 4 * (Bt * Np * Fp + Bt * Np * Np + Fp * H1p + H1p
                       + H1p * H2p + H2p + Bt * Np * H2p)
    vmem_limit = int(min(112 << 20, max(32 << 20, 6 * block_bytes)))

    out_p = pl.pallas_call(
        graphconv_kernel,
        out_shape=jax.ShapeDtypeStruct((B, Np, H2p), dt),
        grid=grid,
        in_specs=[
            pl.BlockSpec((Bt, Np, Fp), lambda i: (i, 0, 0)),
            pl.BlockSpec((Bt, Np, Np), lambda i: (i, 0, 0)),
            pl.BlockSpec((Fp, H1p), lambda i: (0, 0)),
            pl.BlockSpec((1, H1p), lambda i: (0, 0)),
            pl.BlockSpec((H1p, H2p), lambda i: (0, 0)),
            pl.BlockSpec((1, H2p), lambda i: (0, 0)),
        ],
        out_specs=pl.BlockSpec((Bt, Np, H2p), lambda i: (i, 0, 0)),
        compiler_params=pltpu.CompilerParams(
            dimension_semantics=("parallel",),
            vmem_limit_bytes=vmem_limit,
        ),
        cost_estimate=cost,
    )(x_p, adj_p, w1t_p, b1_p, w2t_p, b2_p)

    return out_p[:, :N, :H2]


def reference(x, adj, w1, b1, w2, b2):
    hp = jax.lax.Precision.HIGHEST
    l1 = jnp.einsum('bnf,hf->bnh', x, w1, precision=hp) + b1
    hid = jnp.einsum('brij,bjh->brih', adj, l1, precision=hp).sum(axis=1) + l1
    l2 = jnp.einsum('bnh,oh->bno', hid, w2, precision=hp) + b2
    out = jnp.einsum('brij,bjo->brio', adj, l2, precision=hp).sum(axis=1) + l2
    return out


if __name__ == "__main__":
    # Small shapes consistent with the module's forward:
    B, R, N = 2, 4, 8            # batch, relation types (adj.size(1)), nodes
    F, H1, H2 = 16, 32, 24       # in_features, out_feature_list = [32, 24]

    key = jax.random.PRNGKey(0)
    kx, ka, kw1, kb1, kw2, kb2 = jax.random.split(key, 6)

    x = jax.random.normal(kx, (B, N, F), dtype=jnp.float32)
    adj = jax.random.uniform(ka, (B, R, N, N), dtype=jnp.float32)

    # Deterministic nn.Linear-style init (uniform(-1/sqrt(fan_in), 1/sqrt(fan_in)))
    bnd1 = 1.0 / math.sqrt(F)
    w1 = jax.random.uniform(kw1, (H1, F), dtype=jnp.float32, minval=-bnd1, maxval=bnd1)
    b1 = jax.random.uniform(kb1, (H1,), dtype=jnp.float32, minval=-bnd1, maxval=bnd1)
    bnd2 = 1.0 / math.sqrt(H1)
    w2 = jax.random.uniform(kw2, (H2, H1), dtype=jnp.float32, minval=-bnd2, maxval=bnd2)
    b2 = jax.random.uniform(kb2, (H2,), dtype=jnp.float32, minval=-bnd2, maxval=bnd2)

    out = jax.block_until_ready(graph_convolution(x, adj, w1, b1, w2, b2))
    ref = jax.block_until_ready(reference(x, adj, w1, b1, w2, b2))

    np.testing.assert_allclose(np.asarray(out), np.asarray(ref), rtol=1e-3, atol=1e-3)

    print("KERNEL_OK")
</pallas_src>

<mosaic_0001>
module attributes {stable_mosaic.version = 11 : i64} {
  func.func @graphconv_kernel(%arg0: i32, %arg1: memref<1x8x128xf32, #tpu.memory_space<vmem>>, %arg2: memref<1x8x8xf32, #tpu.memory_space<vmem>>, %arg3: memref<128x128xf32, #tpu.memory_space<vmem>>, %arg4: memref<1x128xf32, #tpu.memory_space<vmem>>, %arg5: memref<128x128xf32, #tpu.memory_space<vmem>>, %arg6: memref<1x128xf32, #tpu.memory_space<vmem>>, %arg7: memref<1x8x128xf32, #tpu.memory_space<vmem>>) attributes {dimension_semantics = [#tpu.dimension_semantics<parallel>], iteration_bounds = array<i64: 2>, scalar_prefetch = 0 : i64, scratch_operands = 0 : i64, tpu.core_type = #tpu.core_type<tc>, window_params = [{transform_indices = @transform_0, window_bounds = array<i64: 1, 8, 128>}, {transform_indices = @transform_1, window_bounds = array<i64: 1, 8, 8>}, {pipeline_mode = #tpu.pipeline_mode<synchronous>, transform_indices = @transform_2, window_bounds = array<i64: 128, 128>}, {pipeline_mode = #tpu.pipeline_mode<synchronous>, transform_indices = @transform_3, window_bounds = array<i64: 1, 128>}, {pipeline_mode = #tpu.pipeline_mode<synchronous>, transform_indices = @transform_4, window_bounds = array<i64: 128, 128>}, {pipeline_mode = #tpu.pipeline_mode<synchronous>, transform_indices = @transform_5, window_bounds = array<i64: 1, 128>}, {transform_indices = @transform_6, window_bounds = array<i64: 1, 8, 128>}]} {
    %c0 = arith.constant 0 : index
    %c0_0 = arith.constant 0 : index
    %c0_1 = arith.constant 0 : index
    %0 = vector.load %arg1[%c0, %c0_0, %c0_1] : memref<1x8x128xf32, #tpu.memory_space<vmem>>, vector<1x8x128xf32>
    %1 = vector.shape_cast %0 : vector<1x8x128xf32> to vector<8x128xf32>
    %c0_2 = arith.constant 0 : index
    %c0_3 = arith.constant 0 : index
    %2 = vector.load %arg3[%c0_2, %c0_3] : memref<128x128xf32, #tpu.memory_space<vmem>>, vector<128x128xf32>
    %cst = arith.constant dense<0.000000e+00> : vector<8x128xf32>
    %3 = tpu.matmul %1, %2, %cst {dimension_numbers = #tpu.dot_dimension_numbers<[1], [0], [0], [1], [0, 0, 1, 1], [], []>} : vector<8x128xf32>, vector<128x128xf32>, vector<8x128xf32> -> vector<8x128xf32>
    %c0_4 = arith.constant 0 : index
    %c0_5 = arith.constant 0 : index
    %4 = vector.load %arg4[%c0_4, %c0_5] : memref<1x128xf32, #tpu.memory_space<vmem>>, vector<1x128xf32>
    %5 = vector.broadcast %4 : vector<1x128xf32> to vector<8x128xf32>
    %6 = arith.addf %3, %5 : vector<8x128xf32>
    %c0_6 = arith.constant 0 : index
    %c0_7 = arith.constant 0 : index
    %c0_8 = arith.constant 0 : index
    %7 = vector.load %arg2[%c0_6, %c0_7, %c0_8] : memref<1x8x8xf32, #tpu.memory_space<vmem>>, vector<1x8x8xf32>
    %8 = vector.shape_cast %6 : vector<8x128xf32> to vector<1x8x128xf32>
    "tpu.trace_start"() <{level = 10 : i32, message = "bij,bjh->bih"}> : () -> ()
    %cst_9 = arith.constant dense<0.000000e+00> : vector<1x8x128xf32>
    %9 = tpu.matmul %7, %8, %cst_9 {dimension_numbers = #tpu.dot_dimension_numbers<[2], [1], [1], [2], [0, 0, 0, 1, 1, 2], [0], [0]>} : vector<1x8x8xf32>, vector<1x8x128xf32>, vector<1x8x128xf32> -> vector<1x8x128xf32>
    "tpu.trace_stop"() : () -> ()
    %10 = vector.shape_cast %9 : vector<1x8x128xf32> to vector<8x128xf32>
    %c0_10 = arith.constant 0 : index
    %c0_11 = arith.constant 0 : index
    %11 = vector.load %arg5[%c0_10, %c0_11] : memref<128x128xf32, #tpu.memory_space<vmem>>, vector<128x128xf32>
    %cst_12 = arith.constant dense<0.000000e+00> : vector<8x128xf32>
    %12 = tpu.matmul %10, %11, %cst_12 {dimension_numbers = #tpu.dot_dimension_numbers<[1], [0], [0], [1], [0, 0, 1, 1], [], []>} : vector<8x128xf32>, vector<128x128xf32>, vector<8x128xf32> -> vector<8x128xf32>
    %c0_13 = arith.constant 0 : index
    %c0_14 = arith.constant 0 : index
    %13 = vector.load %arg6[%c0_13, %c0_14] : memref<1x128xf32, #tpu.memory_space<vmem>>, vector<1x128xf32>
    %14 = vector.broadcast %13 : vector<1x128xf32> to vector<8x128xf32>
    %15 = arith.addf %12, %14 : vector<8x128xf32>
    %16 = vector.shape_cast %15 : vector<8x128xf32> to vector<1x8x128xf32>
    "tpu.trace_start"() <{level = 10 : i32, message = "bij,bjh->bih"}> : () -> ()
    %cst_15 = arith.constant dense<0.000000e+00> : vector<1x8x128xf32>
    %17 = tpu.matmul %7, %16, %cst_15 {dimension_numbers = #tpu.dot_dimension_numbers<[2], [1], [1], [2], [0, 0, 0, 1, 1, 2], [0], [0]>} : vector<1x8x8xf32>, vector<1x8x128xf32>, vector<1x8x128xf32> -> vector<1x8x128xf32>
    "tpu.trace_stop"() : () -> ()
    %c0_16 = arith.constant 0 : index
    %c0_17 = arith.constant 0 : index
    %c0_18 = arith.constant 0 : index
    %18 = vector.load %arg7[%c0_16, %c0_17, %c0_18] : memref<1x8x128xf32, #tpu.memory_space<vmem>>, vector<1x8x128xf32>
    tpu.vector_store %arg7[%c0_16, %c0_17, %c0_18], %17 {strides = array<i32>} : memref<1x8x128xf32, #tpu.memory_space<vmem>>, vector<1x8x128xf32>,
    return
  }
  func.func @transform_0(%arg0: i32) -> (i32, i32, i32) {
    %c0_i32 = arith.constant 0 : i32
    %c0_i32_0 = arith.constant 0 : i32
    %c0_i32_1 = arith.constant 0 : i32
    return %arg0, %c0_i32, %c0_i32_0 : i32, i32, i32
  }
  func.func @transform_1(%arg0: i32) -> (i32, i32, i32) {
    %c0_i32 = arith.constant 0 : i32
    %c0_i32_0 = arith.constant 0 : i32
    %c0_i32_1 = arith.constant 0 : i32
    return %arg0, %c0_i32, %c0_i32_0 : i32, i32, i32
  }
  func.func @transform_2(%arg0: i32) -> (i32, i32) {
    %c0_i32 = arith.constant 0 : i32
    %c0_i32_0 = arith.constant 0 : i32
    %c0_i32_1 = arith.constant 0 : i32
    return %c0_i32, %c0_i32_0 : i32, i32
  }
  func.func @transform_3(%arg0: i32) -> (i32, i32) {
    %c0_i32 = arith.constant 0 : i32
    %c0_i32_0 = arith.constant 0 : i32
    %c0_i32_1 = arith.constant 0 : i32
    return %c0_i32, %c0_i32_0 : i32, i32
  }
  func.func @transform_4(%arg0: i32) -> (i32, i32) {
    %c0_i32 = arith.constant 0 : i32
    %c0_i32_0 = arith.constant 0 : i32
    %c0_i32_1 = arith.constant 0 : i32
    return %c0_i32, %c0_i32_0 : i32, i32
  }
  func.func @transform_5(%arg0: i32) -> (i32, i32) {
    %c0_i32 = arith.constant 0 : i32
    %c0_i32_0 = arith.constant 0 : i32
    %c0_i32_1 = arith.constant 0 : i32
    return %c0_i32, %c0_i32_0 : i32, i32
  }
  func.func @transform_6(%arg0: i32) -> (i32, i32, i32) {
    %c0_i32 = arith.constant 0 : i32
    %c0_i32_0 = arith.constant 0 : i32
    %c0_i32_1 = arith.constant 0 : i32
    return %arg0, %c0_i32, %c0_i32_0 : i32, i32, i32
  }
}

</mosaic_0001>

<bundles_post_ra>
// kernel: tpu_custom_call.1
= control target key start
LH: loop header
LB: loop body
LE: loop exit
PB: predicated region body
PF: predicated region fallthrough
CT: control target
= control target key end

     0   :  { %s1526_s0 = inlined_call_operand.hbm [shape: f32[2,8,128], index: 0, kind: input, shape index: {}]   ;;  %s1527_s1 = inlined_call_operand.hbm [shape: f32[2,8,8], index: 1, kind: input, shape index: {}]   ;;  %s1528_s2 = inlined_call_operand.hbm [shape: f32[128,128], index: 2, kind: input, shape index: {}]   ;;  %s1529_s3 = inlined_call_operand.vmem [shape: f32[1,128], index: 3, kind: input, shape index: {}]   ;;  %s1530_s4 = inlined_call_operand.hbm [shape: f32[128,128], index: 4, kind: input, shape index: {}]   ;;  %s1531_s5 = inlined_call_operand.vmem [shape: f32[1,128], index: 5, kind: input, shape index: {}]   ;;  %s1532_s6 = inlined_call_operand.hbm [shape: f32[2,8,128], index: 6, kind: output, shape index: {}]  }
   0x1   :  { %1537 = sst [smem:[#allocation17_spill]] %s1528_s2 }
   0x2   :  { %1538 = sst [smem:[#allocation18_spill]] %s1530_s4 }
   0x3   :  { %11 = vsyncpa [#allocation3], 0 }
   0x4   :  { %13 = vsyncpa [#allocation3 + $0x1], 0 }
   0x5   :  { %14 = vsyncpa [#allocation6], 0 }
   0x6   :  { %16 = vsyncpa [#allocation6 + $0x1], 0 }
   0x7   :  { %17 = vsyncpa [#allocation9], 0 }
   0x8   :  { %18 = vsyncpa [#allocation4], 0 }
   0x9   :  { %20 = vsyncpa [#allocation4 + $0x1], 0  ;;  %s1239_s21 = smov 0   ;;  %s1241_s22 = smov 0  }
   0xa   :  { %s1243_s23 = smov 0   ;;  %s1245_s24 = smov 0  }
   0xb LB: > { %s1260_s25 = sadd.s32 4294967295, %s1193_s24   ;;  %s792_s26 = sadd.s32 4294967294, %s1193_s24   ;;  %s1193_s24 = sphi %s1245_s24, %s1562_s24   ;;  %s1189_s23 = sphi %s1243_s23, %s1561_s23   ;;  %s1185_s22 = sphi %s1241_s22, %s1560_s22   ;;  %s1181_s21 = sphi %s1239_s21, %s1559_s21  }
   0xc   : > { %p46_p0 = scmp.ne.s32.totalorder %s1185_s22, %s1181_s21  ;;  %p1533_p1 = scmp.eq.s32.totalorder %s1260_s25, 0 }
   0xd   : > { %p186_p3 = scmp.eq.s32.totalorder %s792_s26, 1  ;;  %p793_p5 = scmp.ge.s32.totalorder %s1193_s24, 1 }
   0xe   : > { %p1269_p4 = por %p1533_p1, %p46_p0  ;;  %p193_p7 = scmp.lt.s32.totalorder %s1193_s24, 3 }
   0xf   : > { %p1274_p6 = por %p186_p3, %p46_p0  ;;  %s1195_s30 = smov [#allocation7]  }
  0x10   : > { %s1539_s27 = scalar_select %p1269_p4, 1, 0 }
  0x11   : > { %s1540_s28 = scalar_select %p1274_p6, 1, 0 }
  0x12   : > { %p1279_p8 = pnand %p793_p5, %p193_p7  ;;  %s205_s7 = sshll.u32 %s1195_s30, 4  ;;  %s206_s7 = int_to_ptr.vmem [resolvable:$true] %s205_s7 }
  0x13   : > { %s1196_s9 = smov [#allocation8]   ;;  %s1020_s11 = scalar_lea.vmem %s206_s7, 2048 }
  0x14   : > { %s1541_s29 = scalar_select %p1279_p8, 1, 0 }
  0x15   : > { %p947_p9 = pneg %p1279_p8  ;;  %s221_s10 = sshll.u32 %s1196_s9, 4  ;;  %s222_s10 = int_to_ptr.vmem [resolvable:$true] %s221_s10 }
  0x16   : > { %p1021_p13 = scmp.ne.s32.totalorder %s206_s7, %s1020_s11  ;;  %p1028_p5 = scmp.lt.s32.totalorder %s206_s7, %s206_s7 }
  0x17   : > { %p1288_p11 = pnand %p947_p9, %p1533_p1  ;;  %p1029_p7 = scmp.lt.s32.totalorder %s1020_s11, %s1020_s11 }
  0x19   : > { %p1011_p12 = pneg %p1288_p11  ;;  %p1030_p10 = por %p1029_p7, %p1028_p5 }
  0x1b   : > { %p1023_p0 = pnand %p1021_p13, %p1011_p12 }
  0x1d   : > { %p1024_p3 = pneg %p1023_p0 }
  0x1f   : > { %p1031_p9 = pnand %p1030_p10, %p1024_p3 }
  0x21   : > { %1034 = shalt.err (!%p1031_p9)
}
  0x22   : > { %s1197_s12 = smov 128   ;;  %s1198_s13 = smov 8  }
  0x23   : > { %s1543_s2 = sld [smem:[#allocation17_spill]]  ;;  %s1046_s16 = scalar_lea.vmem %s222_s10, 2048 }
  0x24   : > { %p1047_p1 = scmp.ne.s32.totalorder %s222_s10, %s1046_s16  ;;  %p1054_p2 = scmp.lt.s32.totalorder %s222_s10, %s222_s10 }
  0x25   : > { %p1055_p6 = scmp.lt.s32.totalorder %s1046_s16, %s1046_s16 }
  0x26   : > { %p1049_p13 = pnand %p1047_p1, %p1011_p12 }
  0x27   : > { %p1056_p5 = por %p1055_p6, %p1054_p2 }
  0x28   : > { %p1050_p0 = pneg %p1049_p13 }
  0x29   : > { %950 = dma.hbm_to_vmem [thread:$0]  (!%p1288_p11), %s1543_s2, 2048, %s206_s7, [#allocation6], %s1197_s12, %s1197_s12, %s1198_s13  }
  0x2a   : > { %p1057_p10 = pnand %p1056_p5, %p1050_p0 }
  0x2c   : > { %1060 = shalt.err (!%p1057_p10)
}
  0x2d   : > { %s1544_s4 = sld [smem:[#allocation18_spill]]  ;;  %s1311_s19 = sadd.s32 1, %s1193_s24  }
  0x2e   : > { %s33_s20 = sadd.s32 1, %s1189_s23  ;;  %s30_s26 = ssub.s32 %s1193_s24, %s1311_s19 }
  0x2f   : > { %p40_p1 = scmp.ne.s32.totalorder %s1189_s23, %s1185_s22  ;;  %p31_p2 = scmp.eq.s32.totalorder %s30_s26, 0 }
  0x30   : > { %p41_p6 = scmp.eq.s32.totalorder %s1193_s24, 0  ;;  %p1545_p12 = scmp.eq.s32.totalorder %s1260_s25, 1 }
  0x31   : > { %p967_p7 = scmp.lt.s32.totalorder %s1193_s24, 2  ;;  %s238_s8 = sand.u32 1, %s1189_s23  }
  0x32   : > { %p1321_p3 = por %p1545_p12, %p40_p1  ;;  %p42_p9 = por %p41_p6, %p40_p1 }
  0x33   : > { %953 = dma.hbm_to_vmem [thread:$0]  (!%p1288_p11), %s1544_s4, 2048, %s222_s10, [#allocation9], %s1197_s12, %s1197_s12, %s1198_s13  }
  0x34   : > { %s1546_s30 = scalar_select %p1321_p3, 1, 0 }
  0x35   : > { %s1327_s7 = scalar_select %p31_p2, %s1189_s23, %s33_s20  }
  0x36   : > { %s1330_s9 = sshll.u32 %s238_s8, 3  ;;  %s798_s10 = sshll.u32 %s1193_s24, 7 }
  0x37   : > { %1547 = sst [smem:[#allocation16_spill]] %s1327_s7  ;;  %s1336_s13 = scalar_lea.hbm %s1526_s0, %s798_s10 }
  0x38   : > { %s242_s14 = scalar_lea.vmem [#allocation2], %s1330_s9  ;;  %p1341_p11 = pnand %p967_p7, %p42_p9 }
  0x39   : > { %s249_s15 = sshll.u32 %s242_s14, 4  ;;  %s1348_s20 = scalar_lea.hbm %s1527_s1, %s798_s10  ;;  %s1339_s15 = int_to_ptr.vmem [resolvable:$true] %s249_s15 }
  0x3a   : > { %s256_s26 = sand.u32 1, %s1193_s24   ;;  %s239_s11 = scalar_lea.sflag [#allocation3], %s238_s8 }
  0x3b   : > { %s1061_s12 = scalar_lea.hbm %s1336_s13, 128  ;;  %p1063_p0 = pneg %p1341_p11 }
  0x3c   : > { %p1062_p13 = scmp.ne.s32.totalorder %s1336_s13, %s1061_s12  ;;  %s1066_s4 = scalar_lea.hbm %s1526_s0, 256 }
  0x3d   : > { %p1067_p1 = scmp.lt.s32.totalorder %s1336_s13, %s1526_s0  ;;  %p1068_p2 = scmp.lt.s32.totalorder %s1066_s4, %s1061_s12 }
  0x3e   : > { %p1064_p5 = pnand %p1063_p0, %p1062_p13 }
  0x3f   : > { %p1069_p6 = por %p1068_p2, %p1067_p1 }
  0x40   : > { %p1065_p10 = pneg %p1064_p5 }
  0x42   : > { %p1070_p12 = pnand %p1069_p6, %p1065_p10 }
  0x44   : > { %1073 = shalt.err (!%p1070_p12)
}
  0x45   : > { %s1074_s8 = scalar_lea.vmem %s1339_s15, 128  ;;  %s1199_s2 = smov [#allocation2]  }
  0x46   : > { %p1075_p7 = scmp.ne.s32.totalorder %s1339_s15, %s1074_s8  ;;  %s1079_s10 = sshll.u32 %s1199_s2, 4  ;;  %s1080_s10 = int_to_ptr.vmem [resolvable:$false] %s1079_s10 }
  0x47   : > { %s1081_s18 = scalar_lea.vmem %s1080_s10, 256  ;;  %p1082_p5 = scmp.lt.s32.totalorder %s1339_s15, %s1080_s10 }
  0x48   : > { %p1077_p9 = pnand %p1075_p7, %p1063_p0  ;;  %p1083_p3 = scmp.lt.s32.totalorder %s1081_s18, %s1074_s8 }
  0x4a   : > { %p1078_p13 = pneg %p1077_p9  ;;  %p1084_p4 = por %p1083_p3, %p1082_p5 }
  0x4c   : > { %p1085_p1 = pnand %p1084_p4, %p1078_p13 }
  0x4e   : > { %1088 = shalt.err (!%p1085_p1)
}
  0x4f   : > { %957 = dma.hbm_to_vmem [thread:$0]  (!%p1341_p11), %s1336_s13, 128, %s1339_s15, %s239_s11  }
  0x50   : > { %s260_s4 = scalar_lea.vmem [#allocation5], %s1330_s9  ;;  %s257_s12 = scalar_lea.sflag [#allocation6], %s256_s26 }
  0x51   : > { %s267_s7 = sshll.u32 %s260_s4, 4  ;;  %s1089_s14 = scalar_lea.hbm %s1348_s20, 128  ;;  %s268_s7 = int_to_ptr.vmem [resolvable:$true] %s267_s7 }
  0x52   : > { %p1090_p3 = scmp.ne.s32.totalorder %s1348_s20, %s1089_s14  ;;  %s1094_s2 = scalar_lea.hbm %s1527_s1, 256 }
  0x53   : > { %p1095_p2 = scmp.lt.s32.totalorder %s1348_s20, %s1527_s1  ;;  %p1096_p6 = scmp.lt.s32.totalorder %s1094_s2, %s1089_s14 }
  0x54   : > { %p1092_p4 = pnand %p1090_p3, %p1063_p0 }
  0x55   : > { %p1097_p12 = por %p1096_p6, %p1095_p2 }
  0x56   : > { %p1093_p10 = pneg %p1092_p4 }
  0x58   : > { %p1098_p7 = pnand %p1097_p12, %p1093_p10 }
  0x5a   : > { %1101 = shalt.err (!%p1098_p7)
}
  0x5b   : > { %s1102_s9 = scalar_lea.vmem %s268_s7, 128  ;;  %s1200_s13 = smov [#allocation5]  }
  0x5c   : > { %p1103_p9 = scmp.ne.s32.totalorder %s268_s7, %s1102_s9  ;;  %s1107_s15 = sshll.u32 %s1200_s13, 4  ;;  %s1108_s15 = int_to_ptr.vmem [resolvable:$false] %s1107_s15 }
  0x5d   : > { %s1109_s26 = scalar_lea.vmem %s1108_s15, 256  ;;  %p1110_p1 = scmp.lt.s32.totalorder %s268_s7, %s1108_s15 }
  0x5e   : > { %p1105_p13 = pnand %p1103_p9, %p1063_p0  ;;  %p1111_p3 = scmp.lt.s32.totalorder %s1109_s26, %s1102_s9 }
  0x60   : > { %p1106_p5 = pneg %p1105_p13  ;;  %p1112_p4 = por %p1111_p3, %p1110_p1 }
  0x62   : > { %p1113_p8 = pnand %p1112_p4, %p1106_p5 }
  0x64   : > { %1116 = shalt.err (!%p1113_p8)
}
  0x65   : > { %960 = dma.hbm_to_vmem [thread:$0]  (!%p1341_p11), %s1348_s20, 128, %s268_s7, %s257_s12  }
  0x66   : > { %p1549_p10 = scmp.ne.s32.totalorder %s1541_s29, 0 }
  0x67   : > { %s1399_s11 = sand.u32 (!%p1549_p10), 1, %s1185_s22   ;;  %p1550_p0 = scmp.ne.s32.totalorder (!%p1549_p10), %s1539_s27, 0 }
  0x68   : > { %276 = sbr.rel (%p1549_p10) target bundleno = 945 (0x3b1), region = 44  ;;  %s1402_s4 = sshll.u32 (!%p1549_p10), %s1399_s11, 3 }
  0x69   : > { %s279_s14 = scalar_lea.sflag (!%p1549_p10), [#allocation3], %s1399_s11  ;;  %s282_s17 = scalar_lea.vmem (!%p1549_p10), [#allocation2], %s1402_s4 }
  0x6d   : > { %1160 = dma.done.wait (%p1550_p0), %s279_s14, 128  }
  0x6e   : > { %1162 = vsyncadd (%p1550_p0), %s279_s14, 4294967168  ;;  %s287_s29 = sand.u32 1, %s1260_s25   ;;  %s291_s20 = scalar_lea.vmem [#allocation5], %s1402_s4 }
  0x6f   : > { %s288_s16 = scalar_lea.sflag [#allocation6], %s287_s29 }
  0x70   : > { %1164 = dma.done.wait (%p1550_p0), %s288_s16, 128  }
  0x71   : > { %1166 = vsyncadd (%p1550_p0), %s288_s16, 4294967168  ;;  %p1551_p8 = scmp.eq.s32.totalorder %s1260_s25, 0 }
  0x73   : > { %1168 = dma.done.wait (%p1551_p8), [#allocation6], 2048   ;;  %p1552_p11 = pmov %p1551_p8 }
  0x74   : > { %p1553_p2 = pmov %p1551_p8 }
  0x75   : > { %1170 = vsyncadd (%p1552_p11), [#allocation6], 4294965248 }
  0x76   : > { %1172 = dma.done.wait (%p1553_p2), [#allocation9], 2048   ;;  %p1554_p6 = pmov %p1553_p2 }
  0x77   : > { %v1201_v0 = vmov 0.0   ;;  %vm1202_vm0 = vmmov 0   ;;  %v349_v1 = vld [vmem:[#allocation7 + $0x78] sm:$0xff]  ;;  %v348_v2 = vld [vmem:[#allocation7 + $0x70] sm:$0xff]  ;;  %v347_v3 = vld [vmem:[#allocation7 + $0x68] sm:$0xff]  ;;  %vm428_vm1 = vcmask 64512  }
  0x78   : > { %1174 = vsyncadd (%p1554_p6), [#allocation9], 4294965248  ;;  %853 = vmatprep.subr.mxu0 %v1201_v0  ;;  %885 = vmatprep.mubr.msk.f32.mxu0 %vm1202_vm0, %v1201_v0  ;;  %v346_v4 = vld [vmem:[#allocation7 + $0x60] sm:$0xff]  ;;  %v345_v5 = vld [vmem:[#allocation7 + $0x58] sm:$0xff]  ;;  %s332_s2 = scalar_lea.vmem [#allocation10], %s1402_s4  ;;  %s812_s18 = sshll.u32 %s1260_s25, 7 }
  0x79   : > { %888 = vmatprep.subr.mxu1 %v1201_v0  ;;  %890 = vmatprep.mubr.msk.f32.mxu1 %vm1202_vm0, %v1201_v0  ;;  %v344_v6 = vld [vmem:[#allocation7 + $0x50] sm:$0xff]  ;;  %v343_v7 = vld [vmem:[#allocation7 + $0x48] sm:$0xff]  ;;  %v342_v8 = vld [vmem:[#allocation7 + $0x40] sm:$0xff]  ;;  %s680_s10 = sshll.u32 %s332_s2, 4  ;;  %s1485_s15 = scalar_lea.hbm %s1532_s6, %s812_s18  ;;  %s1480_s10 = int_to_ptr.vmem [resolvable:$true] %s680_s10 }
  0x7a   : > { %854 = vmatpush3.msra.mxu0 %v349_v1  ;;  %v341_v9 = vld [vmem:[#allocation7 + $0x38] sm:$0xff]  ;;  %v340_v10 = vld [vmem:[#allocation7 + $0x30] sm:$0xff]  ;;  %v339_v11 = vld [vmem:[#allocation7 + $0x28] sm:$0xff]  ;;  %s667_s26 = scalar_lea.sflag [#allocation4], %s1399_s11  ;;  %s1117_s14 = scalar_lea.vmem %s1480_s10, 128 }
  0x7b   : > { %855 = vmatprep.subr.mxu0 %v1201_v0  ;;  %v338_v12 = vld [vmem:[#allocation7 + $0x20] sm:$0xff]  ;;  %v337_v13 = vld [vmem:[#allocation7 + $0x18] sm:$0xff]  ;;  %v336_v14 = vld [vmem:[#allocation7 + $0x10] sm:$0xff]  ;;  %p1118_p12 = scmp.ne.s32.totalorder %s1480_s10, %s1117_s14  ;;  %p1555_p7 = scmp.ne.s32.totalorder %s1546_s30, 0 }
  0x7c   : > { %856 = vmatpush3.msra.mxu0 %v348_v2  ;;  %v335_v15 = vld [vmem:[#allocation7 + $0x8] sm:$0xff]  ;;  %v334_v16 = vld [vmem:[#allocation7] sm:$0xff]  ;;  %v427_v21 = vld [vmem:[%s291_s20] sm:$0xff]  ;;  %s1203_s25 = smov [#allocation10]  }
  0x7d   : > { %857 = vmatprep.subr.mxu0 %v1201_v0  ;;  %v333_v17 = vld [vmem:[%s282_s17] sm:$0xff]  ;;  %v517_v23 = vld [vmem:[#allocation8 + $0x78] sm:$0xff]  ;;  %v516_v24 = vld [vmem:[#allocation8 + $0x70] sm:$0xff]  ;;  %p1119_p9 = pnand %p1118_p12, %p1555_p7  ;;  %s1121_s4 = sshll.u32 %s1203_s25, 4  ;;  %s1122_s4 = int_to_ptr.vmem [resolvable:$false] %s1121_s4 }
  0x7e   : > { %858 = vmatpush3.msra.mxu0 %v347_v3  ;;  %v807_v18 = vld [vmem:[%s1529_s3] ss:$0 sm:$0xff]  ;;  %v515_v25 = vld [vmem:[#allocation8 + $0x68] sm:$0xff]  ;;  %v513_v27 = vld [vmem:[#allocation8 + $0x58] sm:$0xff]  ;;  %s1123_s17 = scalar_lea.vmem %s1122_s4, 256  ;;  %p1124_p5 = scmp.lt.s32.totalorder %s1480_s10, %s1122_s4 }
  0x7f   : > { %859 = vmatprep.subr.mxu0 %v1201_v0  ;;  %v514_v26 = vld [vmem:[#allocation8 + $0x60] sm:$0xff]  ;;  %v512_v28 = vld [vmem:[#allocation8 + $0x50] sm:$0xff]  ;;  %v511_v29 = vld [vmem:[#allocation8 + $0x48] sm:$0xff]  ;;  %p1120_p13 = pneg %p1119_p9  ;;  %p1125_p1 = scmp.lt.s32.totalorder %s1123_s17, %s1117_s14 }
  0x80   : > { %860 = vmatpush3.msra.mxu0 %v346_v4  ;;  %v510_v30 = vld [vmem:[#allocation8 + $0x40] sm:$0xff]  ;;  %v509_v31 = vld [vmem:[#allocation8 + $0x38] sm:$0xff]  ;;  %v508_v32 = vld [vmem:[#allocation8 + $0x30] sm:$0xff] }
  0x81   : > { %861 = vmatprep.subr.mxu0 %v1201_v0  ;;  %v507_v33 = vld [vmem:[#allocation8 + $0x28] sm:$0xff]  ;;  %v506_v34 = vld [vmem:[#allocation8 + $0x20] sm:$0xff]  ;;  %v505_v35 = vld [vmem:[#allocation8 + $0x18] sm:$0xff]  ;;  %p1126_p3 = por %p1125_p1, %p1124_p5 }
  0x82   : > { %862 = vmatpush3.msra.mxu0 %v345_v5  ;;  %v504_v36 = vld [vmem:[#allocation8 + $0x10] sm:$0xff]  ;;  %v503_v37 = vld [vmem:[#allocation8 + $0x8] sm:$0xff]  ;;  %v502_v38 = vld [vmem:[#allocation8] sm:$0xff] }
  0x83   : > { %863 = vmatprep.subr.mxu0 %v1201_v0  ;;  %v809_v41 = vld [vmem:[%s1531_s5] ss:$0 sm:$0xff]  ;;  %p1127_p4 = pnand %p1126_p3, %p1120_p13 }
  0x84   : > { %864 = vmatpush3.msra.mxu0 %v344_v6 }
  0x85   : > { %865 = vmatprep.subr.mxu0 %v1201_v0 }
  0x86   : > { %866 = vmatpush3.msra.mxu0 %v343_v7 }
  0x87   : > { %867 = vmatprep.subr.mxu0 %v1201_v0 }
  0x88   : > { %868 = vmatpush3.msra.mxu0 %v342_v8 }
  0x89   : > { %869 = vmatprep.subr.mxu0 %v1201_v0 }
  0x8a   : > { %870 = vmatpush3.msra.mxu0 %v341_v9 }
  0x8b   : > { %871 = vmatprep.subr.mxu0 %v1201_v0 }
  0x8c   : > { %872 = vmatpush3.msra.mxu0 %v340_v10 }
  0x8d   : > { %873 = vmatprep.subr.mxu0 %v1201_v0 }
  0x8e   : > { %874 = vmatpush3.msra.mxu0 %v339_v11 }
  0x8f   : > { %875 = vmatprep.subr.mxu0 %v1201_v0 }
  0x90   : > { %876 = vmatpush3.msra.mxu0 %v338_v12 }
  0x91   : > { %877 = vmatprep.subr.mxu0 %v1201_v0 }
  0x92   : > { %878 = vmatpush3.msra.mxu0 %v337_v13 }
  0x93   : > { %879 = vmatprep.subr.mxu0 %v1201_v0 }
  0x94   : > { %880 = vmatpush3.msra.mxu0 %v336_v14 }
  0x95   : > { %881 = vmatprep.subr.mxu0 %v1201_v0 }
  0x96   : > { %882 = vmatpush3.msra.mxu0 %v335_v15 }
  0x97   : > { %883 = vmatprep.subr.mxu0 %v1201_v0 }
  0x98   : > { %884 = vmatpush3.msra.mxu0 %v334_v16 }
  0x99   : > { %886 = vmatmul.mubr.f32.vlgmr.msra.gmra.mxu0 %v333_v17  ;;  %928 = vmatprep.subr.mxu0 %v1201_v0 }
  0x9a   : > { %930 = vmatprep.mubr.msk.f32.mxu0 %vm1202_vm0, %v1201_v0 }
 0x159   : > { %v423_v19 = vpop.f32.mrf.mxu0 }
 0x15a   : > { %v424_v20 = vadd.f32 %v807_v18, %v423_v19 }
 0x15b   : > { %v887_v22 = vpop.f32.mrf.mxu0 }
 0x15c   : > { %889 = vmatpush3.msra.mxu1 %v424_v20 }
 0x15d   : > { %891 = vmatmul.mubr.msk.f32.vlgmr.msra.gmra.mxu1 %vm428_vm1, %v427_v21  ;;  %893 = vmatprep.subr.mxu1 %v1201_v0 }
 0x15e   : > { %894 = vmatpush3.msra.mxu1 %v517_v23  ;;  %925 = vmatprep.mubr.msk.f32.mxu1 %vm1202_vm0, %v1201_v0 }
 0x15f   : > { %895 = vmatprep.subr.mxu1 %v1201_v0 }
 0x160   : > { %896 = vmatpush3.msra.mxu1 %v516_v24 }
 0x161   : > { %897 = vmatprep.subr.mxu1 %v1201_v0 }
 0x162   : > { %898 = vmatpush3.msra.mxu1 %v515_v25 }
 0x163   : > { %899 = vmatprep.subr.mxu1 %v1201_v0 }
 0x164   : > { %900 = vmatpush3.msra.mxu1 %v514_v26 }
 0x165   : > { %901 = vmatprep.subr.mxu1 %v1201_v0 }
 0x166   : > { %902 = vmatpush3.msra.mxu1 %v513_v27 }
 0x167   : > { %903 = vmatprep.subr.mxu1 %v1201_v0 }
 0x168   : > { %904 = vmatpush3.msra.mxu1 %v512_v28 }
 0x169   : > { %905 = vmatprep.subr.mxu1 %v1201_v0 }
 0x16a   : > { %906 = vmatpush3.msra.mxu1 %v511_v29 }
 0x16b   : > { %907 = vmatprep.subr.mxu1 %v1201_v0 }
 0x16c   : > { %908 = vmatpush3.msra.mxu1 %v510_v30 }
 0x16d   : > { %909 = vmatprep.subr.mxu1 %v1201_v0 }
 0x16e   : > { %910 = vmatpush3.msra.mxu1 %v509_v31 }
 0x16f   : > { %911 = vmatprep.subr.mxu1 %v1201_v0 }
 0x170   : > { %912 = vmatpush3.msra.mxu1 %v508_v32 }
 0x171   : > { %913 = vmatprep.subr.mxu1 %v1201_v0 }
 0x172   : > { %914 = vmatpush3.msra.mxu1 %v507_v33 }
 0x173   : > { %915 = vmatprep.subr.mxu1 %v1201_v0 }
 0x174   : > { %916 = vmatpush3.msra.mxu1 %v506_v34 }
 0x175   : > { %917 = vmatprep.subr.mxu1 %v1201_v0 }
 0x176   : > { %918 = vmatpush3.msra.mxu1 %v505_v35 }
 0x177   : > { %919 = vmatprep.subr.mxu1 %v1201_v0 }
 0x178   : > { %920 = vmatpush3.msra.mxu1 %v504_v36 }
 0x179   : > { %921 = vmatprep.subr.mxu1 %v1201_v0 }
 0x17a   : > { %922 = vmatpush3.msra.mxu1 %v503_v37 }
 0x17b   : > { %923 = vmatprep.subr.mxu1 %v1201_v0 }
 0x17c   : > { %924 = vmatpush3.msra.mxu1 %v502_v38 }
 0x21d   : > { %v498_v39 = vpop.f32.mrf.mxu1 }
 0x21e   : > { %926 = vmatmul.mubr.f32.vlgmr.msra.gmra.mxu1 %v498_v39 }
 0x21f   : > { %v892_v40 = vpop.f32.mrf.mxu1 }
 0x2de   : > { %v591_v42 = vpop.f32.mrf.mxu1 }
 0x2df   : > { %v592_v43 = vadd.f32 %v809_v41, %v591_v42 }
 0x2e0   : > { %v927_v44 = vpop.f32.mrf.mxu1 }
 0x2e1   : > { %929 = vmatpush3.msra.mxu0 %v592_v43 }
 0x2e2   : > { %931 = vmatmul.mubr.msk.f32.vlgmr.msra.gmra.mxu0 %vm428_vm1, %v427_v21 }
 0x3a2   : > { %v661_v45 = vpop.f32.mrf.mxu0 }
 0x3a3   : > { %665 = vst [vmem:[%s332_s2] sm:$0xff] %v661_v45 }
 0x3a4   : > { %v932_v46 = vpop.f32.mrf.mxu0 }
 0x3a5   : > { %1130 = shalt.err (!%p1127_p4)
}
 0x3a6   : > { %s1131_s29 = scalar_lea.hbm %s1485_s15, 128  ;;  %s1135_s20 = scalar_lea.hbm %s1532_s6, 256 }
 0x3a7   : > { %p1132_p10 = scmp.ne.s32.totalorder %s1485_s15, %s1131_s29  ;;  %p1136_p11 = scmp.lt.s32.totalorder %s1485_s15, %s1532_s6 }
 0x3a8   : > { %p1137_p2 = scmp.lt.s32.totalorder %s1135_s20, %s1131_s29 }
 0x3a9   : > { %p1133_p0 = pnand %p1132_p10, %p1555_p7 }
 0x3aa   : > { %p1138_p6 = por %p1137_p2, %p1136_p11 }
 0x3ab   : > { %p1134_p8 = pneg %p1133_p0 }
 0x3ad   : > { %p1139_p12 = pnand %p1138_p6, %p1134_p8 }
 0x3af   : > { %1142 = shalt.err (!%p1139_p12)
}
 0x3b0   : > { %945 = dma.vmem_to_hbm [thread:$0]  (%p1555_p7), %s1480_s10, 128, %s1485_s15, %s667_s26  }
 0x3b1 PF: > { %s692_s12 = sand.u32 1, %s1181_s21   ;;  %p1556_p9 = scmp.ne.s32.totalorder %s1540_s28, 0 }
 0x3b2   : > { %p1557_p13 = scmp.ge.s32.totalorder %s1193_s24, 2  ;;  %s693_s8 = scalar_lea.sflag [#allocation4], %s692_s12 }
 0x3b4   : > { %p962_p5 = pnand %p1557_p13, %p1556_p9 }
 0x3b6   : > { %p963_p1 = pneg %p962_p5 }
 0x3b8   : > { %1176 = dma.done.wait (%p963_p1), %s693_s8, 128  }
 0x3b9   : > { %1178 = vsyncadd (%p963_p1), %s693_s8, 4294967168  ;;  %s1558_s2 = sld [smem:[#allocation16_spill]]  ;;  %p23_p3 = scmp.ge.s32.totalorder %s1311_s19, 4  }
 0x3ba   : > { %s1559_s21 = smov %s1185_s22  ;;  %s1560_s22 = smov %s1189_s23 }
 0x3bb   : > { %s1562_s24 = smov %s1311_s19  ;;  %25 = sbr.rel (!%p23_p3) target bundleno = 11 (0xb), region = 110 }
 0x3bf   : > { %s1561_s23 = smov %s1558_s2 }
 0x3c0   :  { %698 = vsyncpa [#allocation3], 1 }
 0x3c1   :  { %700 = vsyncpa [#allocation3 + $0x1], 1 }
 0x3c2   :  { %701 = vsyncpa [#allocation6], 1 }
 0x3c3   :  { %703 = vsyncpa [#allocation6 + $0x1], 1 }
 0x3c4   :  { %704 = vsyncpa [#allocation9], 1 }
 0x3c5   :  { %705 = vsyncpa [#allocation4], 1 }
 0x3c6   :  { %707 = vsyncpa [#allocation4 + $0x1], 1 }

</bundles_post_ra>
